<compile_context>
chip_gen: v5e
topology: v5e:2x2
jax: 0.10.0
libtpu: 0.0.40
codegen_flags: <defaults>
</compile_context>

<pallas_src>
import math
import functools

import jax
import jax.numpy as jnp
from jax.experimental import pallas as pl
from jax.experimental.pallas import tpu as pltpu


_NUMPY_PAD_MODE = {"constant": "constant", "replicate": "edge", "circular": "wrap"}


def _to_2tuple(v):
    if isinstance(v, (tuple, list)):
        return tuple(v)
    return (v, v)


def _compute_pads(h, w, kernel, stride, dilation):
    kh, kw = kernel
    sh, sw = stride
    dh, dw = dilation
    h2 = math.ceil(h / sh)
    w2 = math.ceil(w / sw)
    pad_row = (h2 - 1) * sh + (kh - 1) * dh + 1 - h
    pad_col = (w2 - 1) * sw + (kw - 1) * dw + 1 - w
    # (pad_l, pad_r, pad_t, pad_b) -- identical to the PyTorch reference.
    return pad_col // 2, pad_col - pad_col // 2, pad_row // 2, pad_row - pad_row // 2


def _round_up(a, b):
    return -(-a // b) * b


def _pad_slab_kernel(x_ref, o_ref, *, pads, mode):
    """Block shapes: x (P, H, W) -> out (P, Hp, Wp).

    One column-padded interior slab (the only intermediate, and itself part of
    the final output) + two small border-row stores.  Every output element is
    written exactly once (store traffic == Hp*Wp per plane).
    """
    pad_l, pad_r, pad_t, pad_b = pads
    x = x_ref[...]
    p, h, w = x.shape
    wp = w + pad_l + pad_r

    # --- column (W) padding: (P, H, W) -> (P, H, Wp) ---
    cols = []
    if pad_l > 0:
        if mode == "constant":
            cols.append(jnp.zeros((p, h, pad_l), x.dtype))
        elif mode == "replicate":
            cols.append(jnp.broadcast_to(x[:, :, :1], (p, h, pad_l)))
        else:  # circular
            cols.append(x[:, :, w - pad_l:])
    cols.append(x)
    if pad_r > 0:
        if mode == "constant":
            cols.append(jnp.zeros((p, h, pad_r), x.dtype))
        elif mode == "replicate":
            cols.append(jnp.broadcast_to(x[:, :, w - 1:], (p, h, pad_r)))
        else:  # circular
            cols.append(x[:, :, :pad_r])
    xc = jnp.concatenate(cols, axis=2) if len(cols) > 1 else x  # (P, H, Wp)

    # Interior rows: single full-width store.
    o_ref[:, pad_t:pad_t + h, :] = xc

    # Top border rows (derived from the already column-padded rows).
    if pad_t > 0:
        if mode == "constant":
            top = jnp.zeros((p, pad_t, wp), x.dtype)
        elif mode == "replicate":
            top = jnp.broadcast_to(xc[:, :1, :], (p, pad_t, wp))
        else:  # circular
            top = xc[:, h - pad_t:, :]
        o_ref[:, :pad_t, :] = top

    # Bottom border rows.
    if pad_b > 0:
        if mode == "constant":
            bot = jnp.zeros((p, pad_b, wp), x.dtype)
        elif mode == "replicate":
            bot = jnp.broadcast_to(xc[:, h - 1:, :], (p, pad_b, wp))
        else:  # circular
            bot = xc[:, :pad_b, :]
        o_ref[:, pad_t + h:pad_t + h + pad_b, :] = bot


def _vmem_budget_bytes():
    """Per-generation VMEM working-set budget + physical capacity."""
    try:
        cap = int(pltpu.get_tpu_info().vmem_capacity_bytes)
    except Exception:
        cap = 64 << 20  # conservative: v7x per-TensorCore VMEM
    # Working-set target for one grid step (incl. double-buffered in/out
    # blocks): big enough to sit on the HBM-roofline plateau, with headroom
    # below physical VMEM on every generation (v5e/v6e 128 MiB, v7x 64 MiB).
    budget = min(cap // 3, 24 << 20)
    return cap, budget


def _choose_plane_block(n, per_plane_bytes, budget_bytes):
    """Planes per grid step.  Prefer an even, balanced step count (>=2 when
    possible) so both v7x TensorCores stream; a non-divisor leading-axis block
    is fine for a copy (the OOB tail of the last block is dropped on write)."""
    p_max = max(1, budget_bytes // per_plane_bytes)
    if n <= p_max:
        steps = 2 if n >= 2 else 1
    else:
        steps = -(-n // p_max)
        if steps % 2:
            steps += 1
    return -(-n // steps)


def exact_padding_2d(x, kernel, stride=1, dilation=1, mode="same"):
    """JAX/Pallas equivalent of excact_padding_2d (PyTorch, NCHW)."""
    assert x.ndim == 4, f"Only support 4D tensor input, but got {x.shape}"
    kernel = _to_2tuple(kernel)
    stride = _to_2tuple(stride)
    dilation = _to_2tuple(dilation)
    b, c, h, w = x.shape
    pad_l, pad_r, pad_t, pad_b = _compute_pads(h, w, kernel, stride, dilation)

    # Reference semantics: mode == 'symmetric' skips F.pad entirely.
    if mode == "symmetric":
        return x

    eff_mode = "constant" if mode == "same" else mode
    if eff_mode not in ("constant", "replicate", "circular"):
        # TODO(synk): 'reflect' padding mode is not implemented.
        raise NotImplementedError(f"Unsupported padding mode: {mode}")

    # Negative pads (possible when kernel==1 and stride>1): F.pad crops, so
    # crop here and hand the kernel non-negative pads only.
    # TODO(synk): mixed negative/positive pads with non-constant modes follow
    # crop-then-pad semantics here.
    crop_l, crop_r = max(0, -pad_l), max(0, -pad_r)
    crop_t, crop_b = max(0, -pad_t), max(0, -pad_b)
    if crop_l or crop_r or crop_t or crop_b:
        x = x[:, :, crop_t:h - crop_b, crop_l:w - crop_r]
        b, c, h, w = x.shape
        pad_l, pad_r = max(0, pad_l), max(0, pad_r)
        pad_t, pad_b = max(0, pad_t), max(0, pad_b)

    if pad_l == 0 and pad_r == 0 and pad_t == 0 and pad_b == 0:
        return x

    if eff_mode == "circular":
        assert pad_t <= h and pad_b <= h and pad_l <= w and pad_r <= w, (
            "circular padding requires pad <= input size")

    hp = h + pad_t + pad_b
    wp = w + pad_l + pad_r
    n = b * c
    itemsize = jnp.dtype(x.dtype).itemsize

    # Per-plane VMEM working set, vreg-tiling aware (rows->8, lanes->128):
    # double-buffered in/out blocks + column-padded interior + border rows.
    in_t = _round_up(h, 8) * _round_up(w, 128) * itemsize
    out_t = _round_up(hp, 8) * _round_up(wp, 128) * itemsize
    xc_t = _round_up(h, 8) * _round_up(wp, 128) * itemsize
    brd_t = (_round_up(max(pad_t, 1), 8) + _round_up(max(pad_b, 1), 8)) \
        * _round_up(wp, 128) * itemsize
    per_plane = 2 * in_t + 2 * out_t + xc_t + brd_t

    cap, budget = _vmem_budget_bytes()

    if per_plane > budget:
        if per_plane <= int(cap * 0.55):
            # One plane per step still fits comfortably with headroom.
            p_blk = 1
            vmem_limit = min(per_plane + (8 << 20), int(cap * 0.7))
        else:
            # TODO(synk): H-row tiling with halo handling for planes too large
            # for VMEM; fall back to XLA's pad (which can also fuse into the
            # downstream consumer) instead of failing to compile.
            np_pads = ((0, 0), (0, 0), (pad_t, pad_b), (pad_l, pad_r))
            return jnp.pad(x, np_pads, mode=_NUMPY_PAD_MODE[eff_mode])
    else:
        p_blk = _choose_plane_block(n, per_plane, budget)
        vmem_limit = min(budget + (8 << 20), cap // 2)

    grid = (pl.cdiv(n, p_blk),)
    xin = x.reshape(n, h, w)

    kern = functools.partial(
        _pad_slab_kernel, pads=(pad_l, pad_r, pad_t, pad_b), mode=eff_mode)
    # TODO(synk): sweep pipeline_mode=pl.Buffered(3) on in_specs for the last
    # few % of DMA overlap once blocks are large.
    out = pl.pallas_call(
        kern,
        out_shape=jax.ShapeDtypeStruct((n, hp, wp), x.dtype),
        grid=grid,
        in_specs=[pl.BlockSpec((p_blk, h, w), lambda i: (i, 0, 0))],
        out_specs=pl.BlockSpec((p_blk, hp, wp), lambda i: (i, 0, 0)),
        compiler_params=pltpu.CompilerParams(
            dimension_semantics=("parallel",),
            vmem_limit_bytes=int(vmem_limit)),
    )(xin)
    return out.reshape(b, c, hp, wp)


class ExactPadding2d:
    """Stateless module mirroring the PyTorch ExactPadding2d."""

    def __init__(self, kernel, stride=1, dilation=1, mode="same"):
        self.kernel = _to_2tuple(kernel)
        self.stride = _to_2tuple(stride)
        self.dilation = _to_2tuple(dilation)
        self.mode = mode

    def __call__(self, x):
        return exact_padding_2d(x, self.kernel, self.stride, self.dilation, self.mode)


if __name__ == "__main__":
    key = jax.random.PRNGKey(0)
    x = jax.random.normal(key, (2, 4, 16, 16), dtype=jnp.float32)

    pad_l, pad_r, pad_t, pad_b = _compute_pads(16, 16, (7, 7), (1, 1), (1, 1))
    np_pads = ((0, 0), (0, 0), (pad_t, pad_b), (pad_l, pad_r))

    # 'same' (zero) padding -- the typical NIQE path (7x7 kernel, stride 1).
    y = jax.block_until_ready(ExactPadding2d(7, mode="same")(x))
    y_ref = jnp.pad(x, np_pads, mode="constant")
    assert y.shape == y_ref.shape, (y.shape, y_ref.shape)
    assert jnp.allclose(y, y_ref), "mismatch vs constant padding reference"

    # replicate padding.
    y = jax.block_until_ready(ExactPadding2d(7, mode="replicate")(x))
    assert jnp.allclose(y, jnp.pad(x, np_pads, mode="edge")), "replicate mismatch"

    # circular padding.
    y = jax.block_until_ready(ExactPadding2d(7, mode="circular")(x))
    assert jnp.allclose(y, jnp.pad(x, np_pads, mode="wrap")), "circular mismatch"

    # 'symmetric' skips padding entirely (reference semantics).
    y = jax.block_until_ready(ExactPadding2d(7, mode="symmetric")(x))
    assert jnp.allclose(y, x), "symmetric mismatch"

    # Odd plane count -> balanced 2-step grid with a partial last block.
    x3 = jax.random.normal(jax.random.PRNGKey(1), (1, 3, 16, 16), dtype=jnp.float32)
    y = jax.block_until_ready(ExactPadding2d(7, mode="replicate")(x3))
    assert jnp.allclose(y, jnp.pad(x3, np_pads, mode="edge")), "partial-block mismatch"

    # Negative padding (kernel=1, stride=2): F.pad crops; we crop identically.
    y = jax.block_until_ready(ExactPadding2d(1, stride=2, mode="same")(x))
    assert jnp.allclose(y, x[:, :, 1:, 1:]), "negative-pad crop mismatch"

    print("KERNEL_OK")
</pallas_src>

<mosaic_0001>
module attributes {stable_mosaic.version = 11 : i64} {
  func.func @_pad_slab_kernel(%arg0: i32, %arg1: memref<4x16x16xf32, #tpu.memory_space<vmem>>, %arg2: memref<4x22x22xf32, #tpu.memory_space<vmem>>) attributes {dimension_semantics = [#tpu.dimension_semantics<parallel>], iteration_bounds = array<i64: 2>, scalar_prefetch = 0 : i64, scratch_operands = 0 : i64, tpu.core_type = #tpu.core_type<tc>, window_params = [{transform_indices = @transform_0, window_bounds = array<i64: 4, 16, 16>}, {transform_indices = @transform_1, window_bounds = array<i64: 4, 22, 22>}]} {
    %c0 = arith.constant 0 : index
    %c0_0 = arith.constant 0 : index
    %c0_1 = arith.constant 0 : index
    %0 = vector.load %arg1[%c0, %c0_0, %c0_1] : memref<4x16x16xf32, #tpu.memory_space<vmem>>, vector<4x16x16xf32>
    %cst = arith.constant 0.000000e+00 : f32
    %1 = vector.broadcast %cst : f32 to vector<4x16x3xf32>
    %cst_2 = arith.constant 0.000000e+00 : f32
    %2 = vector.broadcast %cst_2 : f32 to vector<4x16x3xf32>
    %3 = tpu.concatenate %1, %0, %2 in 2 : vector<4x16x3xf32>, vector<4x16x16xf32>, vector<4x16x3xf32> -> vector<4x16x22xf32>
    %c0_3 = arith.constant 0 : index
    %c3 = arith.constant 3 : index
    %c0_4 = arith.constant 0 : index
    %4 = vector.load %arg2[%c0_3, %c3, %c0_4] : memref<4x22x22xf32, #tpu.memory_space<vmem>>, vector<4x16x22xf32>
    tpu.vector_store %arg2[%c0_3, %c3, %c0_4], %3 {strides = array<i32>} : memref<4x22x22xf32, #tpu.memory_space<vmem>>, vector<4x16x22xf32>,
    %cst_5 = arith.constant 0.000000e+00 : f32
    %5 = vector.broadcast %cst_5 : f32 to vector<4x3x22xf32>
    %c0_6 = arith.constant 0 : index
    %c0_7 = arith.constant 0 : index
    %c0_8 = arith.constant 0 : index
    %6 = vector.load %arg2[%c0_6, %c0_7, %c0_8] : memref<4x22x22xf32, #tpu.memory_space<vmem>>, vector<4x3x22xf32>
    tpu.vector_store %arg2[%c0_6, %c0_7, %c0_8], %5 {strides = array<i32>} : memref<4x22x22xf32, #tpu.memory_space<vmem>>, vector<4x3x22xf32>,
    %cst_9 = arith.constant 0.000000e+00 : f32
    %7 = vector.broadcast %cst_9 : f32 to vector<4x3x22xf32>
    %c0_10 = arith.constant 0 : index
    %c19 = arith.constant 19 : index
    %c0_11 = arith.constant 0 : index
    %8 = vector.load %arg2[%c0_10, %c19, %c0_11] : memref<4x22x22xf32, #tpu.memory_space<vmem>>, vector<4x3x22xf32>
    tpu.vector_store %arg2[%c0_10, %c19, %c0_11], %7 {strides = array<i32>} : memref<4x22x22xf32, #tpu.memory_space<vmem>>, vector<4x3x22xf32>,
    return
  }
  func.func @transform_0(%arg0: i32) -> (i32, i32, i32) {
    %c0_i32 = arith.constant 0 : i32
    %c0_i32_0 = arith.constant 0 : i32
    %c0_i32_1 = arith.constant 0 : i32
    return %arg0, %c0_i32, %c0_i32_0 : i32, i32, i32
  }
  func.func @transform_1(%arg0: i32) -> (i32, i32, i32) {
    %c0_i32 = arith.constant 0 : i32
    %c0_i32_0 = arith.constant 0 : i32
    %c0_i32_1 = arith.constant 0 : i32
    return %arg0, %c0_i32, %c0_i32_0 : i32, i32, i32
  }
}

</mosaic_0001>

<bundles_post_ra>
// kernel: tpu_custom_call.1
= control target key start
LH: loop header
LB: loop body
LE: loop exit
PB: predicated region body
PF: predicated region fallthrough
CT: control target
= control target key end

     0   :  { %6 = vsyncpa [#allocation3], 0  ;;  %s562_s0 = inlined_call_operand.hbm [shape: f32[8,16,16], index: 0, kind: input, shape index: {}]   ;;  %s563_s1 = inlined_call_operand.vmem [shape: f32[8,22,22], index: 1, kind: output, shape index: {}]  }
   0x1   :  { %8 = vsyncpa [#allocation3 + $0x1], 0  ;;  %s429_s6 = smov 0   ;;  %s431_s7 = smov 0  }
   0x2   :  { %s433_s8 = smov 0   ;;  %s435_s9 = smov 0  }
   0x3 LB: > { %s289_s10 = sadd.s32 4294967295, %s413_s9   ;;  %s449_s11 = sadd.s32 1, %s413_s9   ;;  %s413_s9 = sphi %s435_s9, %s570_s9   ;;  %s409_s8 = sphi %s433_s8, %s569_s8   ;;  %s405_s7 = sphi %s431_s7, %s568_s7   ;;  %s401_s6 = sphi %s429_s6, %s567_s6  }
   0x4   : > { %s18_s12 = ssub.s32 %s413_s9, %s449_s11  ;;  %s21_s13 = sadd.s32 1, %s409_s8 }
   0x5   : > { %p19_p0 = scmp.eq.s32.totalorder %s18_s12, 0  ;;  %p28_p1 = scmp.ne.s32.totalorder %s409_s8, %s405_s7 }
   0x6   : > { %p29_p2 = scmp.eq.s32.totalorder %s413_s9, 0  ;;  %p34_p3 = scmp.ne.s32.totalorder %s405_s7, %s401_s6 }
   0x7   : > { %s459_s14 = scalar_select %p19_p0, %s409_s8, %s21_s13  }
   0x8   : > { %p461_p4 = por %p29_p2, %p28_p1  ;;  %p35_p5 = scmp.eq.s32.totalorder %s289_s10, 0 }
   0x9   : > { %p312_p6 = scmp.lt.s32.totalorder %s413_s9, 2  ;;  %s84_s17 = sand.u32 1, %s409_s8  }
   0xa   : > { %p468_p7 = por %p35_p5, %p34_p3  ;;  %s293_s18 = sshll.u32 %s84_s17, 6 }
   0xb   : > { %s304_s19 = sshll.u32 %s413_s9, 6  ;;  %s88_s23 = scalar_lea.vmem [#allocation2], %s293_s18 }
   0xc   : > { %s94_s22 = scalar_lea.hbm %s562_s0, %s304_s19  ;;  %s97_s24 = sshll.u32 %s88_s23, 4  ;;  %s98_s24 = int_to_ptr.vmem [resolvable:$true] %s97_s24 }
   0xd   : > { %s95_s25 = sshll.u32 %s94_s22, 4  ;;  %p479_p8 = pnand %p312_p6, %p461_p4  ;;  %s96_s25 = int_to_ptr.hbm [resolvable:$true] %s95_s25 }
   0xe   : > { %p297_p9 = scmp.ge.s32.totalorder %s413_s9, 1  ;;  %s85_s27 = scalar_lea.sflag [#allocation3], %s84_s17 }
   0xf   : > { %s349_s28 = sshra.s32 %s96_s25, 4  ;;  %p353_p11 = pneg %p479_p8  ;;  %s350_s28 = int_to_ptr.hbm [resolvable:$true] %s349_s28 }
  0x10   : > { %s351_s29 = scalar_lea.hbm %s350_s28, 64  ;;  %s356_s3 = scalar_lea.hbm %s562_s0, 128 }
  0x11   : > { %p352_p10 = scmp.ne.s32.totalorder %s350_s28, %s351_s29  ;;  %p357_p0 = scmp.lt.s32.totalorder %s350_s28, %s562_s0 }
  0x12   : > { %p358_p1 = scmp.lt.s32.totalorder %s356_s3, %s351_s29 }
  0x13   : > { %p354_p12 = pnand %p353_p11, %p352_p10 }
  0x14   : > { %p359_p2 = por %p358_p1, %p357_p0 }
  0x15   : > { %p355_p13 = pneg %p354_p12 }
  0x17   : > { %p360_p3 = pnand %p359_p2, %p355_p13 }
  0x19   : > { %363 = shalt.err (!%p360_p3)
}
  0x1a   : > { %s415_s6 = smov 128   ;;  %s416_s12 = smov 8  }
  0x1b   : > { %311 = dma.hbm_to_vmem [thread:$0]  (!%p479_p8), %s96_s25, 1024, %s98_s24, %s85_s27, %s415_s6, %s415_s6, %s416_s12  }
  0x1c   : > { %p105_p4 = scmp.lt.s32.totalorder %s413_s9, 3 }
  0x1e   : > { %p106_p5 = pnand %p297_p9, %p105_p4 }
  0x1f   : > { %s111_s13 = sand.u32 (!%p106_p5), 1, %s405_s7  }
  0x20   : > { %109 = sbr.rel (%p106_p5) target bundleno = 174 (0xae), region = 24  ;;  %s298_s15 = sshll.u32 (!%p106_p5), %s111_s13, 6 }
  0x21   : > { %s112_s17 = scalar_lea.sflag (!%p106_p5), [#allocation3], %s111_s13  ;;  %s115_s18 = scalar_lea.vmem (!%p106_p5), [#allocation2], %s298_s15 }
  0x25   : > { %396 = dma.done.wait (%p468_p7), %s112_s17, 1024  }
  0x26   : > { %398 = vsyncadd (%p468_p7), %s112_s17, 4294966272  ;;  %v146_v0 = vld [vmem:[%s115_s18 + $0x10] sm:$0xff]  ;;  %v144_v1 = vld [vmem:[%s115_s18] sm:$0xff]  ;;  %s417_s19 = smov 3   ;;  %s299_s16 = sshll.u32 %s289_s10, 2  ;;  %vm211_vm0 = vcmask 174080  }
  0x27   : > { %164 = vrot.lane.b32.xlu1 %v146_v0, %s417_s19  ;;  %160 = vrot.lane.b32.xlu0 %v144_v1, %s417_s19  ;;  %v148_v2 = vld [vmem:[%s115_s18 + $0x20] sm:$0xff]  ;;  %v147_v3 = vld [vmem:[%s115_s18 + $0x18] sm:$0xff]  ;;  %p138_p6 = scmp.lt.s32.totalorder %s299_s16, 7  ;;  %v418_v8 = vmov 0.0   ;;  %vm184_vm1 = vcmask 23552   ;;  %vm193_vm2 = vcmask 154624  }
  0x28   : > { %168 = vrot.lane.b32.xlu2 %v148_v2, %s417_s19  ;;  %v145_v4 = vld [vmem:[%s115_s18 + $0x8] sm:$0xff]  ;;  %v151_v6 = vld [vmem:[%s115_s18 + $0x38] sm:$0xff]  ;;  %v150_v7 = vld [vmem:[%s115_s18 + $0x30] sm:$0xff]  ;;  %vm202_vm3 = vcmask 179200  }
  0x29   : > { %v149_v5 = vld [vmem:[%s115_s18 + $0x28] sm:$0xff]  ;;  %s572_s16 = smov (!%p138_p6, %s299_s16), 7 }
  0x2a   : > { %s305_s20 = smul.u32 24, %s572_s16 }
  0x2c   : > { %s507_s23 = scalar_lea.vmem %s563_s1, %s305_s20 }
  0x2d   : > { %212 = vst.msk [vmem:[%s507_s23] sm:$0x7] %vm211_vm0, %v418_v8 }
  0x2e   : > { %213 = vst.msk [vmem:[%s507_s23 + $0x18] sm:$0x7] %vm211_vm0, %v418_v8 }
  0x2f   : > { %166 = vrot.lane.b32.xlu1 %v147_v3, %s417_s19  ;;  %162 = vrot.lane.b32.xlu0 %v145_v4, %s417_s19  ;;  %214 = vst.msk [vmem:[%s507_s23 + $0x30] sm:$0x7] %vm211_vm0, %v418_v8 }
  0x30   : > { %170 = vrot.lane.b32.xlu2 %v149_v5, %s417_s19  ;;  %215 = vst.msk [vmem:[%s507_s23 + $0x48] sm:$0x7] %vm211_vm0, %v418_v8 }
  0x31   : > { %216 = vst.msk [vmem:[%s507_s23 + $0x13] sm:$0x7] %vm211_vm0, %v418_v8 }
  0x32   : > { %217 = vst.msk [vmem:[%s507_s23 + $0x2b] sm:$0x7] %vm211_vm0, %v418_v8 }
  0x33   : > { %218 = vst.msk [vmem:[%s507_s23 + $0x43] sm:$0x7] %vm211_vm0, %v418_v8 }
  0x34   : > { %219 = vst.msk [vmem:[%s507_s23 + $0x5b] sm:$0x7] %vm211_vm0, %v418_v8 }
  0x37   : > { %174 = vrot.lane.b32.xlu1 %v151_v6, %s417_s19  ;;  %172 = vrot.lane.b32.xlu0 %v150_v7, %s417_s19 }
  0x82   : > { %v169_v9 = vpop.permute.xlu2 %168 }
  0x83   : > { %v189_v10 = vsel %vm184_vm1, 0.0, %v169_v9 }
  0x84   : > { %v198_v17 = vsel %vm193_vm2, %v189_v10, 0.0 }
  0x85   : > { %207 = vst.msk [vmem:[%s507_s23 + $0x33] sm:$0xff] %vm202_vm3, %v198_v17 }
  0x8a   : > { %v171_v18 = vpop.permute.xlu2 %170 }
  0x8b   : > { %v190_v19 = vsel %vm184_vm1, 0.0, %v171_v18 }
  0x8c   : > { %v199_v26 = vsel %vm193_vm2, %v190_v19, 0.0 }
  0x8d   : > { %208 = vst.msk [vmem:[%s507_s23 + $0x3b] sm:$0xff] %vm202_vm3, %v199_v26 }
  0x99   : > { %v165_v11 = vpop.permute.xlu1 %164  ;;  %v161_v12 = vpop.permute.xlu0 %160 }
  0x9a   : > { %v187_v13 = vsel %vm184_vm1, 0.0, %v165_v11  ;;  %v185_v14 = vsel %vm184_vm1, 0.0, %v161_v12 }
  0x9b   : > { %v196_v15 = vsel %vm193_vm2, %v187_v13, 0.0  ;;  %v194_v16 = vsel %vm193_vm2, %v185_v14, 0.0 }
  0x9c   : > { %203 = vst.msk [vmem:[%s507_s23 + $0x3] sm:$0xff] %vm202_vm3, %v194_v16 }
  0x9d   : > { %205 = vst.msk [vmem:[%s507_s23 + $0x1b] sm:$0xff] %vm202_vm3, %v196_v15 }
  0xa1   : > { %v167_v20 = vpop.permute.xlu1 %166  ;;  %v163_v21 = vpop.permute.xlu0 %162 }
  0xa2   : > { %v188_v22 = vsel %vm184_vm1, 0.0, %v167_v20  ;;  %v186_v23 = vsel %vm184_vm1, 0.0, %v163_v21 }
  0xa3   : > { %v197_v24 = vsel %vm193_vm2, %v188_v22, 0.0  ;;  %v195_v25 = vsel %vm193_vm2, %v186_v23, 0.0 }
  0xa4   : > { %204 = vst.msk [vmem:[%s507_s23 + $0xb] sm:$0xff] %vm202_vm3, %v195_v25 }
  0xa5   : > { %206 = vst.msk [vmem:[%s507_s23 + $0x23] sm:$0xff] %vm202_vm3, %v197_v24 }
  0xa9   : > { %v175_v27 = vpop.permute.xlu1 %174  ;;  %v173_v28 = vpop.permute.xlu0 %172 }
  0xaa   : > { %v192_v29 = vsel %vm184_vm1, 0.0, %v175_v27  ;;  %v191_v30 = vsel %vm184_vm1, 0.0, %v173_v28 }
  0xab   : > { %v201_v31 = vsel %vm193_vm2, %v192_v29, 0.0  ;;  %v200_v32 = vsel %vm193_vm2, %v191_v30, 0.0 }
  0xac   : > { %210 = vst.msk [vmem:[%s507_s23 + $0x53] sm:$0xff] %vm202_vm3, %v201_v31 }
  0xad   : > { %209 = vst.msk [vmem:[%s507_s23 + $0x4b] sm:$0xff] %vm202_vm3, %v200_v32 }
  0xae PF: > { %p11_p7 = scmp.ge.s32.totalorder %s449_s11, 4   ;;  %s567_s6 = smov %s405_s7 }
  0xaf   : > { %s568_s7 = smov %s409_s8  ;;  %s569_s8 = smov %s459_s14 }
  0xb0   : > { %s570_s9 = smov %s449_s11  ;;  %13 = sbr.rel (!%p11_p7) target bundleno = 3 (0x3), region = 64 }
  0xb5   :  { %244 = vsyncpa [#allocation3], 1 }
  0xb6   :  { %246 = vsyncpa [#allocation3 + $0x1], 1 }

</bundles_post_ra>
